<compile_context>
chip_gen: v7x
topology: tpu7x:2x2x1
jax: 0.10.0
libtpu: 0.0.40
codegen_flags: <defaults>
</compile_context>

<pallas_src>
import jax
import jax.numpy as jnp
from jax.experimental import pallas as pl
from jax.experimental.pallas import tpu as pltpu


# ----------------------------- Pallas kernel ------------------------------ #
def make_textcnn_kernel(filter_sizes, TB, L, NF):
    n = len(filter_sizes)
    kmax = max(filter_sizes)

    def kernel(ids_ref, table_ref, wblk_ref, bblk_ref, wfc_ref, bfc_ref,
               out_ref):
        Vp, E = table_ref.shape

        # --- embedding: vectorized gather = one-hot(ids) @ table on the MXU -
        # ids_ref is already time-major: row r = t*TB + b holds token t of
        # batch row b, so every conv window below is a contiguous row range.
        idc = ids_ref[...]                                        # (L*TB, 1) i32
        iota_v = jax.lax.broadcasted_iota(jnp.int32, (L * TB, Vp), 1)
        onehot = (iota_v == idc).astype(jnp.bfloat16)             # (L*TB, Vp)
        emb = jnp.dot(onehot, table_ref[...],
                      preferred_element_type=jnp.float32)          # (L*TB, E)
        emb = emb.astype(jnp.bfloat16)                             # exact (table bf16)

        # --- single fused im2col conv over all filter sizes ------------------
        pad = jnp.zeros(((kmax - 1) * TB, E), jnp.bfloat16)
        embp = jnp.concatenate([emb, pad], axis=0)                 # ((L+kmax-1)*TB, E)
        cols = jnp.concatenate(
            [embp[j * TB:(j + L) * TB, :] for j in range(kmax)], axis=-1
        )                                                          # (L*TB, kmax*E)
        y = jnp.dot(cols, wblk_ref[...],
                    preferred_element_type=jnp.float32)            # (L*TB, n*NF)
        y = jnp.maximum(y + bblk_ref[...], 0.0)                    # f32 bias + ReLU
        y = y.reshape(L, TB, n * NF)

        # mask invalid tail positions of each filter group (ReLU >= 0, so a
        # 0-mask is exact under the max), then global max-pool over time.
        t_iota = jax.lax.broadcasted_iota(jnp.int32, (L, 1, NF), 0)
        maskf = jnp.concatenate(
            [(t_iota < (L - k + 1)).astype(jnp.float32) for k in filter_sizes],
            axis=-1)                                               # (L, 1, n*NF)
        feat = jnp.max(y * maskf, axis=0)                          # (TB, n*NF) f32

        # TODO(synk): nn.Dropout is identity at inference; training-mode
        # stochastic dropout (pltpu.prng_*) is omitted.
        out_ref[...] = (jnp.dot(feat.astype(jnp.bfloat16), wfc_ref[...],
                                preferred_element_type=jnp.float32)
                        + bfc_ref[...])                            # (TB, C) f32

    return kernel


# ------------------------------ JAX wrapper -------------------------------- #
def textcnn_forward(ids, table, conv_weights, conv_biases, filter_sizes,
                    w_fc, b_fc, *, batch_tile=128):
    """ids: (B, L) int; table: (V, E); conv_weights[i]: (NF, 1, k_i, E);
    conv_biases[i]: (NF,); w_fc: (C, NF*len(filter_sizes)); b_fc: (C,)."""
    B, L = ids.shape
    V, E = table.shape
    NF = conv_weights[0].shape[0]
    C = w_fc.shape[0]
    n = len(filter_sizes)
    kmax = max(filter_sizes)
    assert w_fc.shape[1] == n * NF
    assert L >= kmax

    TB = min(batch_tile, B)
    assert B % TB == 0, f"batch {B} must be divisible by batch tile {TB}"
    assert TB % 16 == 0, "batch tile must be a multiple of 16 (bf16 sublanes)"
    nt = B // TB

    # ids: clamp (no OOB table reads), then rearrange to time-major columns
    # per batch tile so the kernel needs no transpose: row r = t*TB + b.
    ids = jnp.clip(ids.astype(jnp.int32), 0, V - 1)
    ids_col = ids.reshape(nt, TB, L).transpose(0, 2, 1).reshape(nt * L * TB, 1)

    # Vocab padded to a lane-friendly multiple of 128; table stored bf16.
    Vp = ((V + 127) // 128) * 128
    table_p = jnp.zeros((Vp, E), jnp.bfloat16).at[:V, :].set(
        table.astype(jnp.bfloat16))

    # Fused block conv weight (kmax*E, n*NF): filter i occupies rows
    # [0, k_i*E) of its NF-wide column block, zeros below.  Biases -> (1, n*NF).
    wblk = jnp.zeros((kmax * E, n * NF), jnp.float32)
    for i, (k, w) in enumerate(zip(filter_sizes, conv_weights)):
        wk = jnp.transpose(w[:, 0, :, :], (1, 2, 0)).reshape(k * E, NF)
        wblk = wblk.at[:k * E, i * NF:(i + 1) * NF].set(wk)
    wblk = wblk.astype(jnp.bfloat16)
    bblk = jnp.concatenate([b.reshape(1, NF) for b in conv_biases],
                           axis=-1).astype(jnp.float32)

    wfc = w_fc.T.astype(jnp.bfloat16)                 # (n*NF, C)
    bfc = b_fc.reshape(1, C).astype(jnp.float32)

    kernel = make_textcnn_kernel(tuple(filter_sizes), TB, L, NF)

    grid_spec = pltpu.PrefetchScalarGridSpec(
        num_scalar_prefetch=0,
        grid=(nt,),                                   # batch tiles
        in_specs=[
            pl.BlockSpec((L * TB, 1), lambda i: (i, 0)),           # ids (time-major)
            pl.BlockSpec((Vp, E), lambda i: (0, 0)),               # embedding table
            pl.BlockSpec((kmax * E, n * NF), lambda i: (0, 0)),    # fused conv W
            pl.BlockSpec((1, n * NF), lambda i: (0, 0)),           # fused conv b
            pl.BlockSpec((n * NF, C), lambda i: (0, 0)),           # fc W
            pl.BlockSpec((1, C), lambda i: (0, 0)),                # fc b
        ],
        out_specs=pl.BlockSpec((TB, C), lambda i: (i, 0)),
    )

    flops = nt * (2 * L * TB * Vp * E
                  + 2 * L * TB * (kmax * E) * (n * NF)
                  + 2 * TB * (n * NF) * C)
    bytes_accessed = (ids_col.size * 4 + table_p.size * 2 + wblk.size * 2
                      + bblk.size * 4 + wfc.size * 2 + bfc.size * 4
                      + B * C * 4)

    return pl.pallas_call(
        kernel,
        grid_spec=grid_spec,
        out_shape=jax.ShapeDtypeStruct((B, C), jnp.float32),
        compiler_params=pltpu.CompilerParams(
            dimension_semantics=("parallel",)),        # megacore on v7x
        cost_estimate=pl.CostEstimate(flops=flops, transcendentals=0,
                                      bytes_accessed=bytes_accessed),
    )(ids_col, table_p, wblk, bblk, wfc, bfc)


# --------------------------- pure-JAX reference ----------------------------- #
def textcnn_reference(ids, table, conv_ws, conv_bs, filter_sizes, w_fc, b_fc):
    B, L = ids.shape
    emb = table[ids]                                              # (B, L, E)
    feats = []
    hp = jax.lax.Precision.HIGHEST
    for k, w, b in zip(filter_sizes, conv_ws, conv_bs):
        Ho = L - k + 1
        wins = jnp.stack([emb[:, t:t + k, :] for t in range(Ho)], axis=1)
        y = jnp.einsum('bhke,fke->bhf', wins, w[:, 0], precision=hp) + b
        y = jnp.maximum(y, 0.0)
        feats.append(jnp.max(y, axis=1))                          # (B, NF)
    feat = jnp.concatenate(feats, axis=-1)
    return jnp.dot(feat, w_fc.T, precision=hp) + b_fc


# --------------------------------- main ------------------------------------ #
if __name__ == "__main__":
    # Small config consistent with the module
    V, E, NF, C = 50, 32, 16, 4            # n_vocab, embed, num_filters, classes
    filter_sizes = (2, 3, 4)
    B, L = 32, 8                           # batch (2 tiles of 16), seq_len

    key = jax.random.PRNGKey(0)
    ks = jax.random.split(key, 4 + 2 * len(filter_sizes))

    # Deterministic synthetic parameters in PyTorch tensor layouts (f32)
    table = jax.random.normal(ks[0], (V, E), jnp.float32) * 0.1
    table = table.at[V - 1].set(0.0)       # padding_idx = n_vocab - 1

    conv_ws, conv_bs = [], []
    for i, k in enumerate(filter_sizes):
        conv_ws.append(jax.random.normal(ks[1 + 2 * i], (NF, 1, k, E),
                                         jnp.float32) * 0.05)
        conv_bs.append(jax.random.normal(ks[2 + 2 * i], (NF,),
                                         jnp.float32) * 0.05)

    w_fc = jax.random.normal(ks[1 + 2 * len(filter_sizes)],
                             (C, NF * len(filter_sizes)), jnp.float32) * 0.05
    b_fc = jax.random.normal(ks[2 + 2 * len(filter_sizes)],
                             (C,), jnp.float32) * 0.05

    ids = jax.random.randint(ks[3 + 2 * len(filter_sizes)], (B, L), 0, V,
                             dtype=jnp.int32)

    out = textcnn_forward(ids, table, conv_ws, conv_bs, filter_sizes,
                          w_fc, b_fc, batch_tile=16)
    out = jax.block_until_ready(out)
    assert out.shape == (B, C) and out.dtype == jnp.float32

    ref = textcnn_reference(ids, table, conv_ws, conv_bs, filter_sizes,
                            w_fc, b_fc)
    assert jnp.allclose(out, ref, atol=3e-2, rtol=3e-2), (
        f"max abs err {jnp.max(jnp.abs(out - ref))}")
    print("KERNEL_OK")
</pallas_src>

<mosaic_0001>
module attributes {stable_mosaic.version = 11 : i64} {
  func.func @kernel(%arg0: i32, %arg1: memref<128x1xi32, #tpu.memory_space<vmem>>, %arg2: memref<128x32xbf16, #tpu.memory_space<vmem>>, %arg3: memref<128x48xbf16, #tpu.memory_space<vmem>>, %arg4: memref<1x48xf32, #tpu.memory_space<vmem>>, %arg5: memref<48x4xbf16, #tpu.memory_space<vmem>>, %arg6: memref<1x4xf32, #tpu.memory_space<vmem>>, %arg7: memref<16x4xf32, #tpu.memory_space<vmem>>) attributes {dimension_semantics = [#tpu.dimension_semantics<parallel>], iteration_bounds = array<i64: 2>, scalar_prefetch = 0 : i64, scratch_operands = 0 : i64, tpu.core_type = #tpu.core_type<tc>, window_params = [{transform_indices = @transform_0, window_bounds = array<i64: 128, 1>}, {pipeline_mode = #tpu.pipeline_mode<synchronous>, transform_indices = @transform_1, window_bounds = array<i64: 128, 32>}, {pipeline_mode = #tpu.pipeline_mode<synchronous>, transform_indices = @transform_2, window_bounds = array<i64: 128, 48>}, {pipeline_mode = #tpu.pipeline_mode<synchronous>, transform_indices = @transform_3, window_bounds = array<i64: 1, 48>}, {pipeline_mode = #tpu.pipeline_mode<synchronous>, transform_indices = @transform_4, window_bounds = array<i64: 48, 4>}, {pipeline_mode = #tpu.pipeline_mode<synchronous>, transform_indices = @transform_5, window_bounds = array<i64: 1, 4>}, {transform_indices = @transform_6, window_bounds = array<i64: 16, 4>}]} {
    %c0 = arith.constant 0 : index
    %c0_0 = arith.constant 0 : index
    %0 = vector.load %arg1[%c0, %c0_0] : memref<128x1xi32, #tpu.memory_space<vmem>>, vector<128x1xi32>
    %1 = tpu.iota {dimensions = array<i32: 1>} : vector<128x128xi32>
    %2 = vector.broadcast %0 : vector<128x1xi32> to vector<128x128xi32>
    %3 = arith.cmpi eq, %1, %2 : vector<128x128xi32>
    %4 = arith.extui %3 : vector<128x128xi1> to vector<128x128xi32>
    %5 = arith.sitofp %4 : vector<128x128xi32> to vector<128x128xf32>
    %6 = arith.truncf %5 : vector<128x128xf32> to vector<128x128xbf16>
    %c0_1 = arith.constant 0 : index
    %c0_2 = arith.constant 0 : index
    %7 = vector.load %arg2[%c0_1, %c0_2] : memref<128x32xbf16, #tpu.memory_space<vmem>>, vector<128x32xbf16>
    %cst = arith.constant dense<0.000000e+00> : vector<128x32xf32>
    %8 = tpu.matmul %6, %7, %cst {dimension_numbers = #tpu.dot_dimension_numbers<[1], [0], [0], [1], [0, 0, 1, 1], [], []>} : vector<128x128xbf16>, vector<128x32xbf16>, vector<128x32xf32> -> vector<128x32xf32>
    %9 = arith.truncf %8 : vector<128x32xf32> to vector<128x32xbf16>
    %cst_3 = arith.constant 0.000000e+00 : bf16
    %10 = vector.broadcast %cst_3 : bf16 to vector<48x32xbf16>
    %11 = tpu.concatenate %9, %10 in 0 : vector<128x32xbf16>, vector<48x32xbf16> -> vector<176x32xbf16>
    %12 = vector.extract_strided_slice %11 {offsets = [0, 0], sizes = [128, 32], strides = [1, 1]} : vector<176x32xbf16> to vector<128x32xbf16>
    %13 = vector.extract_strided_slice %11 {offsets = [16, 0], sizes = [128, 32], strides = [1, 1]} : vector<176x32xbf16> to vector<128x32xbf16>
    %14 = vector.extract_strided_slice %11 {offsets = [32, 0], sizes = [128, 32], strides = [1, 1]} : vector<176x32xbf16> to vector<128x32xbf16>
    %15 = vector.extract_strided_slice %11 {offsets = [48, 0], sizes = [128, 32], strides = [1, 1]} : vector<176x32xbf16> to vector<128x32xbf16>
    %16 = tpu.concatenate %12, %13, %14, %15 in 1 : vector<128x32xbf16>, vector<128x32xbf16>, vector<128x32xbf16>, vector<128x32xbf16> -> vector<128x128xbf16>
    %c0_4 = arith.constant 0 : index
    %c0_5 = arith.constant 0 : index
    %17 = vector.load %arg3[%c0_4, %c0_5] : memref<128x48xbf16, #tpu.memory_space<vmem>>, vector<128x48xbf16>
    %cst_6 = arith.constant dense<0.000000e+00> : vector<128x48xf32>
    %18 = tpu.matmul %16, %17, %cst_6 {dimension_numbers = #tpu.dot_dimension_numbers<[1], [0], [0], [1], [0, 0, 1, 1], [], []>} : vector<128x128xbf16>, vector<128x48xbf16>, vector<128x48xf32> -> vector<128x48xf32>
    %c0_7 = arith.constant 0 : index
    %c0_8 = arith.constant 0 : index
    %19 = vector.load %arg4[%c0_7, %c0_8] : memref<1x48xf32, #tpu.memory_space<vmem>>, vector<1x48xf32>
    %20 = vector.broadcast %19 : vector<1x48xf32> to vector<128x48xf32>
    %21 = arith.addf %18, %20 : vector<128x48xf32>
    %cst_9 = arith.constant 0.000000e+00 : f32
    %22 = vector.broadcast %cst_9 : f32 to vector<128x48xf32>
    %23 = arith.maximumf %21, %22 : vector<128x48xf32>
    %24 = vector.shape_cast %23 : vector<128x48xf32> to vector<8x16x48xf32>
    %25 = tpu.iota {dimensions = array<i32: 0>} : vector<8x1x16xi32>
    %c7_i32 = arith.constant 7 : i32
    %26 = vector.broadcast %c7_i32 : i32 to vector<8x1x16xi32>
    %27 = arith.cmpi slt, %25, %26 : vector<8x1x16xi32>
    %28 = arith.extui %27 : vector<8x1x16xi1> to vector<8x1x16xi32>
    %29 = arith.sitofp %28 : vector<8x1x16xi32> to vector<8x1x16xf32>
    %c6_i32 = arith.constant 6 : i32
    %30 = vector.broadcast %c6_i32 : i32 to vector<8x1x16xi32>
    %31 = arith.cmpi slt, %25, %30 : vector<8x1x16xi32>
    %32 = arith.extui %31 : vector<8x1x16xi1> to vector<8x1x16xi32>
    %33 = arith.sitofp %32 : vector<8x1x16xi32> to vector<8x1x16xf32>
    %c5_i32 = arith.constant 5 : i32
    %34 = vector.broadcast %c5_i32 : i32 to vector<8x1x16xi32>
    %35 = arith.cmpi slt, %25, %34 : vector<8x1x16xi32>
    %36 = arith.extui %35 : vector<8x1x16xi1> to vector<8x1x16xi32>
    %37 = arith.sitofp %36 : vector<8x1x16xi32> to vector<8x1x16xf32>
    %38 = tpu.concatenate %29, %33, %37 in 2 : vector<8x1x16xf32>, vector<8x1x16xf32>, vector<8x1x16xf32> -> vector<8x1x48xf32>
    %39 = vector.broadcast %38 : vector<8x1x48xf32> to vector<8x16x48xf32>
    %40 = arith.mulf %24, %39 : vector<8x16x48xf32>
    %cst_10 = arith.constant dense<0xFF800000> : vector<16x48xf32>
    %41 = vector.multi_reduction <maximumf>, %40, %cst_10 [0] : vector<8x16x48xf32> to vector<16x48xf32>
    %42 = arith.truncf %41 : vector<16x48xf32> to vector<16x48xbf16>
    %c0_11 = arith.constant 0 : index
    %c0_12 = arith.constant 0 : index
    %43 = vector.load %arg5[%c0_11, %c0_12] : memref<48x4xbf16, #tpu.memory_space<vmem>>, vector<48x4xbf16>
    %cst_13 = arith.constant dense<0.000000e+00> : vector<16x4xf32>
    %44 = tpu.matmul %42, %43, %cst_13 {dimension_numbers = #tpu.dot_dimension_numbers<[1], [0], [0], [1], [0, 0, 1, 1], [], []>} : vector<16x48xbf16>, vector<48x4xbf16>, vector<16x4xf32> -> vector<16x4xf32>
    %c0_14 = arith.constant 0 : index
    %c0_15 = arith.constant 0 : index
    %45 = vector.load %arg6[%c0_14, %c0_15] : memref<1x4xf32, #tpu.memory_space<vmem>>, vector<1x4xf32>
    %46 = vector.broadcast %45 : vector<1x4xf32> to vector<16x4xf32>
    %47 = arith.addf %44, %46 : vector<16x4xf32>
    %c0_16 = arith.constant 0 : index
    %c0_17 = arith.constant 0 : index
    %48 = vector.load %arg7[%c0_16, %c0_17] : memref<16x4xf32, #tpu.memory_space<vmem>>, vector<16x4xf32>
    tpu.vector_store %arg7[%c0_16, %c0_17], %47 {strides = array<i32>} : memref<16x4xf32, #tpu.memory_space<vmem>>, vector<16x4xf32>,
    return
  }
  func.func @transform_0(%arg0: i32) -> (i32, i32) {
    %c0_i32 = arith.constant 0 : i32
    %c0_i32_0 = arith.constant 0 : i32
    return %arg0, %c0_i32 : i32, i32
  }
  func.func @transform_1(%arg0: i32) -> (i32, i32) {
    %c0_i32 = arith.constant 0 : i32
    %c0_i32_0 = arith.constant 0 : i32
    %c0_i32_1 = arith.constant 0 : i32
    return %c0_i32, %c0_i32_0 : i32, i32
  }
  func.func @transform_2(%arg0: i32) -> (i32, i32) {
    %c0_i32 = arith.constant 0 : i32
    %c0_i32_0 = arith.constant 0 : i32
    %c0_i32_1 = arith.constant 0 : i32
    return %c0_i32, %c0_i32_0 : i32, i32
  }
  func.func @transform_3(%arg0: i32) -> (i32, i32) {
    %c0_i32 = arith.constant 0 : i32
    %c0_i32_0 = arith.constant 0 : i32
    %c0_i32_1 = arith.constant 0 : i32
    return %c0_i32, %c0_i32_0 : i32, i32
  }
  func.func @transform_4(%arg0: i32) -> (i32, i32) {
    %c0_i32 = arith.constant 0 : i32
    %c0_i32_0 = arith.constant 0 : i32
    %c0_i32_1 = arith.constant 0 : i32
    return %c0_i32, %c0_i32_0 : i32, i32
  }
  func.func @transform_5(%arg0: i32) -> (i32, i32) {
    %c0_i32 = arith.constant 0 : i32
    %c0_i32_0 = arith.constant 0 : i32
    %c0_i32_1 = arith.constant 0 : i32
    return %c0_i32, %c0_i32_0 : i32, i32
  }
  func.func @transform_6(%arg0: i32) -> (i32, i32) {
    %c0_i32 = arith.constant 0 : i32
    %c0_i32_0 = arith.constant 0 : i32
    return %arg0, %c0_i32 : i32, i32
  }
}

</mosaic_0001>

<bundles_post_ra>
// kernel: tpu_custom_call.1
= control target key start
LH: loop header
LB: loop body
LE: loop exit
PB: predicated region body
PF: predicated region fallthrough
CT: control target
= control target key end

     0   :  { %s1314_s21 = smov 0   ;;  %s1544_s0 = inlined_call_operand.vmem [shape: s32[256,1], index: 0, kind: input, shape index: {}]   ;;  %s1545_s1 = inlined_call_operand.vmem [shape: bf16[128,32], index: 1, kind: input, shape index: {}]   ;;  %s1546_s2 = inlined_call_operand.vmem [shape: bf16[128,48], index: 2, kind: input, shape index: {}]   ;;  %s1547_s3 = inlined_call_operand.vmem [shape: f32[1,48], index: 3, kind: input, shape index: {}]   ;;  %s1548_s4 = inlined_call_operand.vmem [shape: bf16[48,4], index: 4, kind: input, shape index: {}]   ;;  %s1549_s5 = inlined_call_operand.vmem [shape: f32[1,4], index: 5, kind: input, shape index: {}]   ;;  %s1550_s6 = inlined_call_operand.vmem [shape: f32[32,4], index: 6, kind: output, shape index: {}]  }
   0x1 LB: > { %s1051_s22 = sadd.s32 4294967295, %s1269_s21   ;;  %p1055_p0 = scmp.ge.s32.totalorder %s1269_s21, 1  ;;  %s1269_s21 = sphi %s1314_s21, %s16_s21  }
   0x2   : > { %p213_p1 = scmp.lt.s32.totalorder %s1269_s21, 3 }
   0x4   : > { %p214_p2 = pnand %p1055_p0, %p213_p1 }
   0x5   : > { %s1056_s23 = sshll.u32 (!%p214_p2), %s1051_s22, 4  ;;  %v1271_v0 = vmov (!%p214_p2), 0   ;;  %v1244_v1 = vld [vmem:[%s1545_s1] sm:$0xff] (!%p214_p2)   ;;  %v1245_v2 = vld [vmem:[%s1545_s1 + $0x8] sm:$0xff] (!%p214_p2)   ;;  %v1246_v3 = vld [vmem:[%s1545_s1 + $0x10] sm:$0xff] (!%p214_p2)   ;;  %v272_v25 = vlaneseq (!%p214_p2)  ;;  %s1273_s12 = smov (!%p214_p2), 32  }
   0x6   : > { %217 = sbr.rel (%p214_p2) target bundleno = 978 (0x3d2), region = 44  ;;  %1243 = vset.pattern.permute.xlu1 (!%p214_p2), %v1271_v0  ;;  %1242 = vset.pattern.permute.xlu0 (!%p214_p2), %v1271_v0  ;;  %p244_p3 = scmp.lt.s32.totalorder (!%p214_p2), %s1056_s23, 31  ;;  %v1247_v8 = vld [vmem:[%s1545_s1 + $0x18] sm:$0xff] (!%p214_p2)   ;;  %v1248_v11 = vld [vmem:[%s1545_s1 + $0x20] sm:$0xff] (!%p214_p2)   ;;  %v1249_v14 = vld [vmem:[%s1545_s1 + $0x28] sm:$0xff] (!%p214_p2)  }
   0x7   : > { %1152 = vmatprep.subr.bf16.mxu0 (!%p214_p2), %v1244_v1  ;;  %v1250_v17 = vld [vmem:[%s1545_s1 + $0x30] sm:$0xff] (!%p214_p2)   ;;  %v1251_v20 = vld [vmem:[%s1545_s1 + $0x38] sm:$0xff] (!%p214_p2)   ;;  %v273_v28 = vand.u32 (!%p214_p2), 127, %v272_v25  ;;  %v1272_v31 = vmov (!%p214_p2), 1.0|1.0   ;;  %v1252_v44 = vld [vmem:[%s1546_s2] sm:$0xff] (!%p214_p2)  }
   0x8   : > { %1153 = vmatpush3.bf16.msra.mxu0 (!%p214_p2), %v1244_v1  ;;  %v1253_v45 = vld [vmem:[%s1546_s2 + $0x8] sm:$0xff] (!%p214_p2)   ;;  %1184 = vmatprep.subr.bf16.mxu1 (!%p214_p2), %v1252_v44  ;;  %v1254_v46 = vld [vmem:[%s1546_s2 + $0x10] sm:$0xff] (!%p214_p2)   ;;  %v1255_v47 = vld [vmem:[%s1546_s2 + $0x18] sm:$0xff] (!%p214_p2)   ;;  %s1274_s15 = smov (!%p214_p2), 96   ;;  %s1275_s16 = smov (!%p214_p2), 64  }
   0x9   : > { %1154 = vmatprep.subr.bf16.mxu0 (!%p214_p2), %v1245_v2  ;;  %1185 = vmatpush3.bf16.msra.mxu1 (!%p214_p2), %v1252_v44  ;;  %v1256_v48 = vld [vmem:[%s1546_s2 + $0x20] sm:$0xff] (!%p214_p2)   ;;  %v1257_v49 = vld [vmem:[%s1546_s2 + $0x28] sm:$0xff] (!%p214_p2)   ;;  %v1258_v55 = vld [vmem:[%s1546_s2 + $0x30] sm:$0xff] (!%p214_p2)   ;;  %s1058_s27 = sshll.u32 (!%p214_p2), %s1051_s22, 1 }
   0xa   : > { %1186 = vmatprep.subr.bf16.mxu1 (!%p214_p2), %v1253_v45  ;;  %v1259_v57 = vld [vmem:[%s1546_s2 + $0x38] sm:$0xff] (!%p214_p2)   ;;  %p250_p4 = scmp.lt.s32.totalorder (!%p214_p2), %s1058_s27, 3 }
   0xc   : > { %1155 = vmatpush3.bf16.msra.mxu0 (!%p214_p2), %v1245_v2 }
   0xd   : > { %s1552_s23 = smov (!%p244_p3, %s1056_s23), 31  ;;  %1156 = vmatprep.subr.bf16.mxu0 %v1246_v3  ;;  %1187 = vmatpush3.bf16.msra.mxu1 %v1253_v45  ;;  %s1554_s27 = smov (!%p250_p4, %s1058_s27), 3 }
   0xe   : > { %s1057_s28 = sshll.u32 %s1552_s23, 3  ;;  %1188 = vmatprep.subr.bf16.mxu1 %v1254_v46 }
   0xf   : > { %s1335_s7 = scalar_lea.vmem %s1544_s0, %s1057_s28  ;;  %s1059_s28 = sshll.u32 %s1554_s27, 3 }
  0x10   : > { %v258_v4 = vld [vmem:[%s1335_s7 + $0x10] sm:$0xff]  ;;  %v256_v5 = vld [vmem:[%s1335_s7] sm:$0xff]  ;;  %v259_v6 = vld [vmem:[%s1335_s7 + $0x18] sm:$0xff]  ;;  %1157 = vmatpush3.bf16.msra.mxu0 %v1246_v3  ;;  %s253_s9 = scalar_lea.vmem %s1550_s6, %s1059_s28 }
  0x11   : > { %281 = vperm.xlu1 %1243, %v258_v4   ;;  %275 = vperm.xlu0 %1242, %v256_v5   ;;  %v257_v7 = vld [vmem:[%s1335_s7 + $0x8] sm:$0xff]  ;;  %v260_v10 = vld [vmem:[%s1335_s7 + $0x20] sm:$0xff]  ;;  %v263_v12 = vld [vmem:[%s1335_s7 + $0x38] sm:$0xff] }
  0x12   : > { %v261_v9 = vld [vmem:[%s1335_s7 + $0x28] sm:$0xff]  ;;  %1158 = vmatprep.subr.bf16.mxu0 %v1247_v8  ;;  %v262_v13 = vld [vmem:[%s1335_s7 + $0x30] sm:$0xff]  ;;  %v264_v16 = vld [vmem:[%s1335_s7 + $0x40] sm:$0xff]  ;;  %1189 = vmatpush3.bf16.msra.mxu1 %v1254_v46 }
  0x13   : > { %v265_v15 = vld [vmem:[%s1335_s7 + $0x48] sm:$0xff]  ;;  %v267_v18 = vld [vmem:[%s1335_s7 + $0x58] sm:$0xff]  ;;  %v266_v19 = vld [vmem:[%s1335_s7 + $0x50] sm:$0xff]  ;;  %1190 = vmatprep.subr.bf16.mxu1 %v1255_v47 }
  0x14   : > { %1159 = vmatpush3.bf16.msra.mxu0 %v1247_v8  ;;  %v269_v21 = vld [vmem:[%s1335_s7 + $0x68] sm:$0xff]  ;;  %v268_v22 = vld [vmem:[%s1335_s7 + $0x60] sm:$0xff]  ;;  %v271_v23 = vld [vmem:[%s1335_s7 + $0x78] sm:$0xff] }
  0x15   : > { %284 = vperm.xlu1 %1243, %v259_v6   ;;  %278 = vperm.xlu0 %1242, %v257_v7   ;;  %v270_v24 = vld [vmem:[%s1335_s7 + $0x70] sm:$0xff] }
  0x16   : > { %1160 = vmatprep.subr.bf16.mxu0 %v1248_v11  ;;  %1191 = vmatpush3.bf16.msra.mxu1 %v1255_v47 }
  0x17   : > { %1192 = vmatprep.subr.bf16.mxu1 %v1256_v48 }
  0x18   : > { %1161 = vmatpush3.bf16.msra.mxu0 %v1248_v11 }
  0x19   : > { %290 = vperm.xlu1 %1243, %v261_v9   ;;  %287 = vperm.xlu0 %1242, %v260_v10  }
  0x1a   : > { %1162 = vmatprep.subr.bf16.mxu0 %v1249_v14  ;;  %1193 = vmatpush3.bf16.msra.mxu1 %v1256_v48 }
  0x1b   : > { %1194 = vmatprep.subr.bf16.mxu1 %v1257_v49 }
  0x1c   : > { %1163 = vmatpush3.bf16.msra.mxu0 %v1249_v14 }
  0x1d   : > { %296 = vperm.xlu1 %1243, %v263_v12   ;;  %293 = vperm.xlu0 %1242, %v262_v13  }
  0x1e   : > { %1164 = vmatprep.subr.bf16.mxu0 %v1250_v17  ;;  %1195 = vmatpush3.bf16.msra.mxu1 %v1257_v49 }
  0x1f   : > { %1196 = vmatprep.subr.bf16.mxu1 %v1258_v55 }
  0x20   : > { %1165 = vmatpush3.bf16.msra.mxu0 %v1250_v17 }
  0x21   : > { %302 = vperm.xlu1 %1243, %v265_v15   ;;  %299 = vperm.xlu0 %1242, %v264_v16  }
  0x22   : > { %1166 = vmatprep.subr.bf16.mxu0 %v1251_v20  ;;  %1197 = vmatpush3.bf16.msra.mxu1 %v1258_v55 }
  0x23   : > { %1198 = vmatprep.subr.bf16.mxu1 %v1259_v57 }
  0x24   : > { %1167 = vmatpush3.bf16.msra.mxu0 %v1251_v20 }
  0x25   : > { %308 = vperm.xlu1 %1243, %v267_v18   ;;  %305 = vperm.xlu0 %1242, %v266_v19  }
  0x26   : > { %1199 = vmatpush3.bf16.msra.mxu1 %v1259_v57 }
  0x29   : > { %314 = vperm.xlu1 %1243, %v269_v21   ;;  %311 = vperm.xlu0 %1242, %v268_v22  }
  0x2d   : > { %320 = vperm.xlu1 %1243, %v271_v23   ;;  %317 = vperm.xlu0 %1242, %v270_v24  }
  0x90   : > { %v282_v26 = vpop.permute.xlu1 %281  ;;  %v276_v27 = vpop.permute.xlu0 %275 }
  0x91   : > { %vm324_vm0 = vcmp.eq.s32.totalorder %v273_v28, %v282_v26  ;;  %vm322_vm3 = vcmp.eq.s32.totalorder %v273_v28, %v276_v27 }
  0x94   : > { %v285_v29 = vpop.permute.xlu1 %284  ;;  %v279_v30 = vpop.permute.xlu0 %278 }
  0x95   : > { %vm325_vm1 = vcmp.eq.s32.totalorder %v273_v28, %v285_v29  ;;  %vm323_vm2 = vcmp.eq.s32.totalorder %v273_v28, %v279_v30 }
  0x96   : > { %vm1086_vm4 = vmpackc.low %vm325_vm1, %vm324_vm0 }
  0x97   : > { %vm1084_vm5 = vmpackc.low %vm323_vm2, %vm322_vm3 }
  0x98   : > { %1168 = vmatprep.mubr.msk.bf16.mxu0 %vm1084_vm5, %v1272_v31  ;;  %v291_v32 = vpop.permute.xlu1 %290  ;;  %v288_v33 = vpop.permute.xlu0 %287 }
  0x99   : > { %vm327_vm6 = vcmp.eq.s32.totalorder %v273_v28, %v291_v32  ;;  %1169 = vmatmul.mubr.msk.bf16.vlgmr.msra.gmra.mrb[0].mxu0 %vm1086_vm4, %v1272_v31  ;;  %vm326_vm7 = vcmp.eq.s32.totalorder %v273_v28, %v288_v33 }
  0x9a   : > { %vm1088_vm8 = vmpackc.low %vm327_vm6, %vm326_vm7 }
  0x9b   : > { %1172 = vmatprep.mubr.msk.bf16.mxu0 %vm1088_vm8, %v1272_v31  ;;  %vm597_vm8 = vcmask 261120  }
  0x9c   : > { %v297_v34 = vpop.permute.xlu1 %296  ;;  %v294_v35 = vpop.permute.xlu0 %293 }
  0x9d   : > { %vm329_vm9 = vcmp.eq.s32.totalorder %v273_v28, %v297_v34  ;;  %vm328_vm10 = vcmp.eq.s32.totalorder %v273_v28, %v294_v35 }
  0x9e   : > { %vm1090_vm11 = vmpackc.low %vm329_vm9, %vm328_vm10  ;;  %vm638_vm9 = vcmask 785408   ;;  %vm622_vm10 = vcmask 523264  }
  0xa0   : > { %v303_v36 = vpop.permute.xlu1 %302  ;;  %v300_v37 = vpop.permute.xlu0 %299 }
  0xa1   : > { %vm331_vm12 = vcmp.eq.s32.totalorder %v273_v28, %v303_v36  ;;  %1173 = vmatmul.mubr.msk.bf16.gmra.mrb[4].mxu0 %vm1090_vm11, %v1272_v31  ;;  %vm330_vm13 = vcmp.eq.s32.totalorder %v273_v28, %v300_v37  ;;  %vm1277_vm11 = vmmov 0  }
  0xa2   : > { %vm1092_vm14 = vmpackc.low %vm331_vm12, %vm330_vm13  ;;  %vm885_vm12 = vcmask 392192   ;;  %vm847_vm13 = vcmask 130048  }
  0xa3   : > { %1176 = vmatprep.mubr.msk.bf16.mxu0 %vm1092_vm14, %v1272_v31  ;;  %vm992_vm14 = vcmask 31744  }
  0xa4   : > { %v309_v38 = vpop.permute.xlu1 %308  ;;  %v306_v39 = vpop.permute.xlu0 %305 }
  0xa5   : > { %vm333_vm15 = vcmp.eq.s32.totalorder %v273_v28, %v309_v38  ;;  %vm332_vm0 = vcmp.eq.s32.totalorder %v273_v28, %v306_v39 }
  0xa6   : > { %vm1094_vm1 = vmpackc.low %vm333_vm15, %vm332_vm0 }
  0xa8   : > { %v315_v40 = vpop.permute.xlu1 %314  ;;  %v312_v41 = vpop.permute.xlu0 %311 }
  0xa9   : > { %vm335_vm2 = vcmp.eq.s32.totalorder %v273_v28, %v315_v40  ;;  %1177 = vmatmul.mubr.msk.bf16.gmra.mrb[8].mxu0 %vm1094_vm1, %v1272_v31  ;;  %vm334_vm3 = vcmp.eq.s32.totalorder %v273_v28, %v312_v41 }
  0xaa   : > { %vm1096_vm4 = vmpackc.low %vm335_vm2, %vm334_vm3 }
  0xab   : > { %1180 = vmatprep.mubr.msk.bf16.mxu0 %vm1096_vm4, %v1272_v31 }
  0xac   : > { %v321_v42 = vpop.permute.xlu1 %320  ;;  %v318_v43 = vpop.permute.xlu0 %317 }
  0xad   : > { %vm337_vm5 = vcmp.eq.s32.totalorder %v273_v28, %v321_v42  ;;  %vm336_vm6 = vcmp.eq.s32.totalorder %v273_v28, %v318_v43 }
  0xae   : > { %vm1098_vm7 = vmpackc.low %vm337_vm5, %vm336_vm6 }
  0xb1   : > { %1181 = vmatmul.mubr.msk.bf16.gmra.mrb[12].mxu0 %vm1098_vm7, %v1272_v31 }
 0x16c   : > { %v1170_v50 = vpop.f32.mrb[0].mxu0 }
 0x16d   : > { %v1390_v51 = vpop.f32.mrb[1].mxu0 }
 0x16e   : > { %v1171_v52 = vpop.f32.mrb[2].mxu0 }
 0x16f   : > { %v1392_v53 = vpack.c.bf16 %v1171_v52, %v1170_v50  ;;  %v479_v54 = vpop.f32.mrb[3].mxu0 }
 0x170   : > { %v539_v56 = vpack.c.bf16 %v479_v54, %v1390_v51 }
 0x171   : > { %555 = vrot.lane.b32.xlu0 %v1392_v53, %s1273_s12 }
 0x174   : > { %v1174_v58 = vpop.f32.mrb[4].mxu0 }
 0x175   : > { %v492_v59 = vpop.f32.mrb[5].mxu0 }
 0x176   : > { %v1175_v60 = vpop.f32.mrb[6].mxu0 }
 0x177   : > { %v1403_v61 = vpack.c.bf16 %v1175_v60, %v1174_v58  ;;  %v495_v62 = vpop.f32.mrb[7].mxu0  ;;  %v1276_v58 = vmov 0.0   ;;  %v1261_v60 = vld [vmem:[%s1548_s4 + $0x8] sm:$0xff]  }
 0x178   : > { %v541_v63 = vpack.c.bf16 %v495_v62, %v492_v59  ;;  %1216 = vmatprep.subr.bf16.mxu0 %v1276_v58  ;;  %v1260_v59 = vld [vmem:[%s1548_s4] sm:$0xff]   ;;  %1222 = vmatprep.mubr.msk.bf16.mxu0 %vm1277_vm11, %v1276_v58 }
 0x179   : > { %585 = vrot.lane.b32.xlu0 %v1403_v61, %s1274_s15  ;;  %573 = vrot.lane.b32.xlu1 %v1403_v61, %s1275_s16 }
 0x17a   : > { %1217 = vmatpush3.bf16.msra.mxu0 %v1260_v59 }
 0x17b   : > { %1218 = vmatprep.subr.bf16.mxu0 %v1276_v58 }
 0x17c   : > { %v1178_v1 = vpop.f32.mrb[8].mxu0 }
 0x17d   : > { %559 = vrot.lane.b32.xlu0 %v1403_v61, %s1273_s12  ;;  %557 = vrot.lane.b32.xlu1 %v541_v63, %s1273_s12  ;;  %v508_v2 = vpop.f32.mrb[9].mxu0 }
 0x17e   : > { %v1179_v3 = vpop.f32.mrb[10].mxu0  ;;  %1219 = vmatpush3.bf16.msra.mxu0 %v1261_v60  ;;  %v848_v60 = vsel %vm847_vm13, 1.0, %v1276_v58 }
 0x17f   : > { %v1412_v4 = vpack.c.bf16 %v1179_v3, %v1178_v1  ;;  %v511_v5 = vpop.f32.mrb[11].mxu0  ;;  %1220 = vmatprep.subr.bf16.mxu0 %v1276_v58 }
 0x180   : > { %v543_v6 = vpack.c.bf16 %v511_v5, %v508_v2  ;;  %v854_v2 = vshrl.u32 %v272_v25, 7 }
 0x181   : > { %571 = vrot.lane.b32.xlu0 %v541_v63, %s1275_s16  ;;  %577 = vrot.lane.b32.xlu1 %v1412_v4, %s1275_s16 }
 0x184   : > { %v1182_v7 = vpop.f32.mrb[12].mxu0 }
 0x185   : > { %589 = vrot.lane.b32.xlu0 %v1412_v4, %s1274_s15  ;;  %587 = vrot.lane.b32.xlu1 %v543_v6, %s1274_s15  ;;  %v524_v8 = vpop.f32.mrb[13].mxu0 }
 0x186   : > { %v1183_v9 = vpop.f32.mrb[14].mxu0 }
 0x187   : > { %v1420_v10 = vpack.c.bf16 %v1183_v9, %v1182_v7  ;;  %v527_v11 = vpop.f32.mrb[15].mxu0 }
 0x188   : > { %v545_v12 = vpack.c.bf16 %v527_v11, %v524_v8  ;;  %v1278_v11 = vmov 1.0  }
 0x189   : > { %563 = vrot.lane.b32.xlu0 %v1412_v4, %s1273_s12  ;;  %561 = vrot.lane.b32.xlu1 %v543_v6, %s1273_s12 }
 0x18d   : > { %575 = vrot.lane.b32.xlu0 %v543_v6, %s1275_s16  ;;  %581 = vrot.lane.b32.xlu1 %v1420_v10, %s1275_s16 }
 0x191   : > { %593 = vrot.lane.b32.xlu0 %v1420_v10, %s1274_s15  ;;  %591 = vrot.lane.b32.xlu1 %v545_v12, %s1274_s15 }
 0x195   : > { %579 = vrot.lane.b32.xlu0 %v545_v12, %s1275_s16  ;;  %565 = vrot.lane.b32.xlu1 %v545_v12, %s1273_s12 }
 0x199   : > { %567 = vrot.lane.b32.xlu0 %v1420_v10, %s1273_s12  ;;  %595 = vrot.lane.b32.xlu1 %v1271_v0, %s1274_s15 }
 0x19d   : > { %583 = vrot.lane.b32.xlu0 %v1271_v0, %s1275_s16  ;;  %569 = vrot.lane.b32.xlu1 %v1271_v0, %s1273_s12 }
 0x1e3   : > { %v556_v13 = vpop.permute.xlu0 %555 }
 0x1e4   : > { %v600_v18 = vsel %vm597_vm8, %v539_v56, %v556_v13 }
 0x1eb   : > { %v574_v14 = vpop.permute.xlu1 %573  ;;  %v586_v15 = vpop.permute.xlu0 %585 }
 0x1ef   : > { %v558_v16 = vpop.permute.xlu1 %557  ;;  %v560_v17 = vpop.permute.xlu0 %559 }
 0x1f0   : > { %v603_v21 = vsel %vm597_vm8, %v1392_v53, %v558_v16  ;;  %v606_v30 = vsel %vm597_vm8, %v541_v63, %v560_v17 }
 0x1f1   : > { %v626_v26 = vsel %vm622_vm10, %v603_v21, %v574_v14 }
 0x1f3   : > { %v578_v19 = vpop.permute.xlu1 %577  ;;  %v572_v20 = vpop.permute.xlu0 %571 }
 0x1f4   : > { %v624_v22 = vsel %vm622_vm10, %v600_v18, %v572_v20 }
 0x1f5   : > { %v640_v23 = vsel %vm638_vm9, %v624_v22, %v586_v15 }
 0x1f6   : > { %1200 = vmatprep.mubr.bf16.mxu1 %v640_v23 }
 0x1f7   : > { %v588_v0 = vpop.permute.xlu1 %587  ;;  %v590_v24 = vpop.permute.xlu0 %589 }
 0x1f8   : > { %v643_v27 = vsel %vm638_vm9, %v626_v26, %v588_v0  ;;  %v850_v0 = vsel %vm597_vm8, 1.0, %v1276_v58 }
 0x1f9   : > { %1201 = vmatmul.mubr.bf16.vlgmr.msra.gmra.mrb[0].mxu1 %v643_v27 }
 0x1fb   : > { %v562_v28 = vpop.permute.xlu1 %561  ;;  %v564_v29 = vpop.permute.xlu0 %563 }
 0x1fc   : > { %v609_v33 = vsel %vm597_vm8, %v1403_v61, %v562_v28  ;;  %v612_v40 = vsel %vm597_vm8, %v543_v6, %v564_v29  ;;  %v1262_v61 = vld [vmem:[%s1548_s4 + $0x10] sm:$0xff]   ;;  %v1489_v6 = vsub.s32 0, %v854_v2 }
 0x1fd   : > { %v630_v38 = vsel %vm622_vm10, %v609_v33, %v578_v19  ;;  %1221 = vmatpush3.bf16.msra.mxu0 %v1262_v61 }
 0x1fe   : > { %v856_v25 = vrot.slane %v1278_v11, %v1489_v6 }
 0x1ff   : > { %v582_v31 = vpop.permute.xlu1 %581  ;;  %v576_v32 = vpop.permute.xlu0 %575 }
 0x200   : > { %v628_v34 = vsel %vm622_vm10, %v606_v30, %v576_v32 }
 0x201   : > { %v646_v35 = vsel %vm638_vm9, %v628_v34, %v590_v24  ;;  %v860_v34 = vrot.slane %v850_v0, %v1489_v6 }
 0x202   : > { %1204 = vmatprep.mubr.bf16.mxu1 %v646_v35 }
 0x203   : > { %v592_v36 = vpop.permute.xlu1 %591  ;;  %v594_v37 = vpop.permute.xlu0 %593 }
 0x204   : > { %v649_v39 = vsel %vm638_vm9, %v630_v38, %v592_v36 }
 0x205   : > { %1205 = vmatmul.mubr.bf16.gmra.mrb[4].mxu1 %v649_v39 }
 0x207   : > { %v566_v41 = vpop.permute.xlu1 %565  ;;  %v580_v42 = vpop.permute.xlu0 %579 }
 0x208   : > { %v615_v43 = vsel %vm597_vm8, %v1412_v4, %v566_v41  ;;  %v632_v44 = vsel %vm622_vm10, %v612_v40, %v580_v42  ;;  %v1486_v4 = vld [vmem:[%s1547_s3] ss:$0 sm:$0xff] }
 0x209   : > { %v652_v45 = vsel %vm638_vm9, %v632_v44, %v594_v37  ;;  %v634_v48 = vsel %vm622_vm10, %v615_v43, %v582_v31 }
 0x20a   : > { %1208 = vmatprep.mubr.bf16.mxu1 %v652_v45 }
 0x20b   : > { %v596_v46 = vpop.permute.xlu1 %595  ;;  %v568_v47 = vpop.permute.xlu0 %567 }
 0x20c   : > { %v655_v49 = vsel %vm638_vm9, %v634_v48, %v596_v46  ;;  %v618_v50 = vsel %vm597_vm8, %v545_v12, %v568_v47 }
 0x20d   : > { %1209 = vmatmul.mubr.bf16.gmra.mrb[8].mxu1 %v655_v49 }
 0x20f   : > { %v570_v51 = vpop.permute.xlu1 %569  ;;  %v584_v52 = vpop.permute.xlu0 %583 }
 0x210   : > { %v621_v53 = vsel %vm597_vm8, %v1420_v10, %v570_v51  ;;  %v636_v54 = vsel %vm622_vm10, %v618_v50, %v584_v52 }
 0x211   : > { %v637_v55 = vsel %vm622_vm10, %v621_v53, %v584_v52  ;;  %v657_v56 = vsel %vm638_vm9, %v636_v54, %v596_v46 }
 0x212   : > { %1212 = vmatprep.mubr.bf16.mxu1 %v657_v56  ;;  %v659_v57 = vsel %vm638_vm9, %v637_v55, %v596_v46 }
 0x215   : > { %1213 = vmatmul.mubr.bf16.gmra.mrb[12].mxu1 %v659_v57 }
 0x2cc   : > { %v1202_v62 = vpop.f32.mrb[0].mxu1 }
 0x2cd   : > { %v766_v63 = vpop.f32.mrb[1].mxu1  ;;  %v775_v5 = vadd.f32 %v1202_v62, %v1486_v4 }
 0x2ce   : > { %v1203_v1 = vpop.f32.mrb[2].mxu1  ;;  %v767_v7 = vadd.f32 %v1486_v4, %v766_v63 }
 0x2cf   : > { %v769_v3 = vpop.f32.mrb[3].mxu1  ;;  %v778_v8 = vadd.f32 %v1203_v1, %v1486_v4  ;;  %v831_v10 = vmax.f32 %v775_v5, 0.0  ;;  %v851_v5 = vsel %vm597_vm8, %v848_v60, 0.0 }
 0x2d0   : > { %v770_v9 = vadd.f32 %v1486_v4, %v769_v3  ;;  %v829_v12 = vmax.f32 %v767_v7, 0.0 }
 0x2d1   : > { %v832_v14 = vmax.f32 %v778_v8, 0.0  ;;  %v871_v20 = vmul.f32 %v856_v25, %v831_v10 }
 0x2d2   : > { %v830_v17 = vmax.f32 %v770_v9, 0.0  ;;  %v869_v24 = vmul.f32 %v856_v25, %v829_v12 }
 0x2d3   : > { %v872_v28 = vmul.f32 %v856_v25, %v832_v14  ;;  %v887_v35 = vsel %vm885_vm12, %v871_v20, -inf  ;;  %v868_v14 = vrot.slane %v1276_v58, %v1489_v6 }
 0x2d4   : > { %v870_v31 = vmul.f32 %v856_v25, %v830_v17  ;;  %v886_v38 = vsel %vm885_vm12, %v869_v24, -inf }
 0x2d5   : > { %v902_v43 = vsel %vm885_vm12, %v872_v28, -inf }
 0x2d6   : > { %v901_v48 = vsel %vm885_vm12, %v870_v31, -inf }
 0x2d8   : > { %v1206_v13 = vpop.f32.mrb[4].mxu1 }
 0x2d9   : > { %v791_v15 = vadd.f32 %v1206_v13, %v1486_v4  ;;  %v782_v16 = vpop.f32.mrb[5].mxu1 }
 0x2da   : > { %v783_v18 = vadd.f32 %v1486_v4, %v782_v16  ;;  %v1207_v19 = vpop.f32.mrb[6].mxu1 }
 0x2db   : > { %v835_v21 = vmax.f32 %v791_v15, 0.0  ;;  %v794_v22 = vadd.f32 %v1207_v19, %v1486_v4  ;;  %v785_v23 = vpop.f32.mrb[7].mxu1  ;;  %v864_v19 = vrot.slane %v851_v5, %v1489_v6 }
 0x2dc   : > { %v833_v26 = vmax.f32 %v783_v18, 0.0  ;;  %v786_v27 = vadd.f32 %v1486_v4, %v785_v23 }
 0x2dd   : > { %v875_v29 = vmul.f32 %v856_v25, %v835_v21  ;;  %v836_v30 = vmax.f32 %v794_v22, 0.0 }
 0x2de   : > { %v873_v32 = vmul.f32 %v856_v25, %v833_v26  ;;  %v834_v33 = vmax.f32 %v786_v27, 0.0 }
 0x2df   : > { %v890_v36 = vsel %vm885_vm12, %v875_v29, -inf  ;;  %v876_v37 = vmul.f32 %v856_v25, %v836_v30 }
 0x2e0   : > { %v891_v39 = vmax.f32 %v887_v35, %v890_v36  ;;  %v888_v40 = vsel %vm885_vm12, %v873_v32, -inf  ;;  %v874_v41 = vmul.f32 %v856_v25, %v834_v33  ;;  %v1210_v42 = vpop.f32.mrb[8].mxu1 }
 0x2e1   : > { %v889_v44 = vmax.f32 %v886_v38, %v888_v40  ;;  %v905_v45 = vsel %vm885_vm12, %v876_v37, -inf  ;;  %v807_v46 = vadd.f32 %v1210_v42, %v1486_v4  ;;  %v798_v47 = vpop.f32.mrb[9].mxu1  ;;  %v1109_v40 = vld [vmem:[%s1549_s5] ss:$0 sm:$0xff] }
 0x2e2   : > { %v906_v49 = vmax.f32 %v902_v43, %v905_v45  ;;  %v903_v50 = vsel %vm885_vm12, %v874_v41, -inf  ;;  %v799_v51 = vadd.f32 %v1486_v4, %v798_v47  ;;  %v1211_v52 = vpop.f32.mrb[10].mxu1 }
 0x2e3   : > { %v904_v53 = vmax.f32 %v901_v48, %v903_v50  ;;  %v839_v54 = vmax.f32 %v807_v46, 0.0  ;;  %v810_v55 = vadd.f32 %v1211_v52, %v1486_v4  ;;  %v801_v56 = vpop.f32.mrb[11].mxu1 }
 0x2e4   : > { %v837_v57 = vmax.f32 %v799_v51, 0.0  ;;  %v802_v59 = vadd.f32 %v1486_v4, %v801_v56 }
 0x2e5   : > { %v879_v61 = vmul.f32 %v860_v34, %v839_v54  ;;  %v840_v62 = vmax.f32 %v810_v55, 0.0 }
 0x2e6   : > { %v877_v63 = vmul.f32 %v856_v25, %v837_v57  ;;  %v838_v1 = vmax.f32 %v802_v59, 0.0 }
 0x2e7   : > { %v894_v2 = vsel %vm885_vm12, %v879_v61, -inf  ;;  %v880_v3 = vmul.f32 %v860_v34, %v840_v62 }
 0x2e8   : > { %v895_v7 = vmax.f32 %v891_v39, %v894_v2  ;;  %v892_v8 = vsel %vm885_vm12, %v877_v63, -inf  ;;  %v878_v9 = vmul.f32 %v856_v25, %v838_v1  ;;  %v1214_v10 = vpop.f32.mrb[12].mxu1 }
 0x2e9   : > { %v893_v11 = vmax.f32 %v889_v44, %v892_v8  ;;  %v909_v12 = vsel %vm885_vm12, %v880_v3, -inf  ;;  %v823_v13 = vadd.f32 %v1214_v10, %v1486_v4  ;;  %v814_v15 = vpop.f32.mrb[13].mxu1 }
 0x2ea   : > { %v910_v16 = vmax.f32 %v906_v49, %v909_v12  ;;  %v907_v17 = vsel %vm885_vm12, %v878_v9, -inf  ;;  %v815_v18 = vadd.f32 %v1486_v4, %v814_v15  ;;  %v1215_v20 = vpop.f32.mrb[14].mxu1 }
 0x2eb   : > { %v908_v21 = vmax.f32 %v904_v53, %v907_v17  ;;  %v843_v25 = vmax.f32 %v823_v13, 0.0  ;;  %v826_v22 = vadd.f32 %v1215_v20, %v1486_v4  ;;  %v817_v23 = vpop.f32.mrb[15].mxu1 }
 0x2ec   : > { %v841_v0 = vmax.f32 %v815_v18, 0.0  ;;  %v818_v24 = vadd.f32 %v1486_v4, %v817_v23 }
 0x2ed   : > { %v883_v26 = vmul.f32 %v868_v14, %v843_v25  ;;  %v844_v27 = vmax.f32 %v826_v22, 0.0 }
 0x2ee   : > { %v881_v58 = vmul.f32 %v864_v19, %v841_v0  ;;  %v842_v28 = vmax.f32 %v818_v24, 0.0 }
 0x2ef   : > { %v898_v29 = vsel %vm885_vm12, %v883_v26, -inf  ;;  %v884_v30 = vmul.f32 %v868_v14, %v844_v27 }
 0x2f0   : > { %v899_v31 = vmax.f32 %v895_v7, %v898_v29  ;;  %v896_v6 = vsel %vm885_vm12, %v881_v58, -inf  ;;  %v882_v32 = vmul.f32 %v864_v19, %v842_v28 }
 0x2f1   : > { %v897_v33 = vmax.f32 %v893_v11, %v896_v6  ;;  %v913_v34 = vsel %vm885_vm12, %v884_v30, -inf }
 0x2f2   : > { %v914_v35 = vmax.f32 %v910_v16, %v913_v34  ;;  %v911_v36 = vsel %vm885_vm12, %v882_v32, -inf }
 0x2f3   : > { %v900_v37 = vmax.f32 %v897_v33, %v899_v31  ;;  %v912_v4 = vmax.f32 %v908_v21, %v911_v36 }
 0x2f5   : > { %v915_v38 = vmax.f32 %v912_v4, %v914_v35 }
 0x2f7   : > { %v916_v39 = vpack.c.bf16 %v915_v38, %v900_v37 }
 0x2f9   : > { %1223 = vmatmul.mubr.msk.bf16.vlgmr.msra.gmra.mrb[16].mxu0 %vm885_vm12, %v916_v39 }
 0x3cc   : > { %v985_v41 = vpop.f32.mrb[16].mxu0 }
 0x3cd   : > { %v986_v42 = vadd.f32 %v1109_v40, %v985_v41  ;;  %v1224_v43 = vpop.f32.mrb[17].mxu0 }
 0x3ce   : > { %v988_v44 = vpop.f32.mrb[18].mxu0 }
 0x3cf   : > { %993 = vst.msk [vmem:[%s253_s9] sm:$0xff] %vm992_vm14, %v986_v42  ;;  %v989_v45 = vadd.f32 %v1109_v40, %v988_v44  ;;  %v1225_v46 = vpop.f32.mrb[19].mxu0 }
 0x3d1   : > { %994 = vst.msk [vmem:[%s253_s9 + $0x8] sm:$0xff] %vm992_vm14, %v989_v45 }
 0x3d2 PF: > { %s16_s21 = sadd.s32 1, %s1269_s21  }
 0x3d3   : > { %p13_p5 = scmp.ge.s32.totalorder %s16_s21, 4  }
 0x3d5   :  { %15 = sbr.rel (!%p13_p5) target bundleno = 1 (0x1), region = 74 }

</bundles_post_ra>
